<compile_context>
chip_gen: v6e
topology: v6e:2x2x1
jax: 0.10.0
libtpu: 0.0.40
codegen_flags: <defaults>
</compile_context>

<pallas_src>
import functools

import jax
import jax.numpy as jnp
from jax import lax
from jax.experimental import pallas as pl
from jax.experimental.pallas import tpu as pltpu


def _round_up(v, m):
    return (v + m - 1) // m * m


# ----------------------------------------------------------------------------
# Fused kernel: 3x3 conv (one K=9*Cin_p matmul over an in-kernel im2col) +
# folded BN*gamma + ReLU + coords bias, single lane-dense store.
# ----------------------------------------------------------------------------
def _fused_chain_kernel(x_ref, w_ref, params_ref, o_ref, *, tap_offsets,
                        lout_pad):
    """One grid step = one batch element.

    x_ref      : (1, Cin_p, Lpad)      f32 VMEM — row-padded, flattened NCHW slab
    w_ref      : (Cout_p, 9*Cin_p)     f32 VMEM — all 9 taps in one 2D tile
    params_ref : (1, Cout_p, 3)        f32 VMEM — [folded_scale, folded_shift, bias_b]
    o_ref      : (1, Cout_p, Lout_pad) f32 VMEM — lane-dense (multiple of 128) output
    """
    # Build the shifted im2col RHS once from 9 static offset ref slices (Mosaic
    # emits offset vector loads; no full-slab register that gets realigned 8x),
    # then ONE wide matmul on the MXU instead of 9 serialized K=Cin_p matmuls.
    rhs = jnp.concatenate(
        [x_ref[0, :, off:off + lout_pad] for off in tap_offsets], axis=0)
    acc = jnp.dot(w_ref[...], rhs, preferred_element_type=jnp.float32)

    # Epilogue: folded BN*gamma + ReLU + per-(batch, channel) coords bias.
    scale = params_ref[0, :, 0:1]                       # (Cout_p, 1)
    shift = params_ref[0, :, 1:2]
    bias = params_ref[0, :, 2:3]
    o_ref[0] = (jnp.maximum(acc * scale + shift, 0.0) + bias).astype(o_ref.dtype)


@jax.jit
def fused_conv_bn_relu_coords_affine(x, coords, w_oihw, bn_scale, bn_shift,
                                     affine_gamma, w_coords):
    """x: (B, Cin, H, W) NCHW, coords: (B, coord_dim). Returns (B, Cout, H, W).

    NOTE: folding affine_gamma through the ReLU requires gamma >= 0; the caller
    (CustomSequential.forward) guards this with a concrete check.
    """
    b, cin, h, w = x.shape
    cout = w_oihw.shape[0]
    wp = w + 2                                   # padded row width (pad=1 each side)
    lout = h * wp                                # true flattened output length (288)
    cin_p = _round_up(cin, 8)
    cout_p = _round_up(cout, 8)
    lout_pad = _round_up(lout, 128)              # lane-dense output -> unmasked vst
    max_off = 2 * wp + 2                         # largest 3x3 tap offset
    lpad = _round_up(lout_pad + max_off, 128)    # every tap slice stays in-bounds

    # Spatial pad (conv padding=1) + contiguity-preserving flatten of
    # (H+2, W+2); pad channels to a sublane multiple and lanes so that every
    # off:off+lout_pad slice reads only real data or zeros (never OOB).
    xpad = jnp.pad(x, ((0, 0), (0, 0), (1, 1), (1, 1)))
    xflat = xpad.reshape(b, cin, (h + 2) * wp).astype(jnp.float32)
    xflat = jnp.pad(xflat, ((0, 0), (0, cin_p - cin), (0, lpad - (h + 2) * wp)))

    # All 9 taps packed into ONE 2D weight tile:
    #   w2d[co, t*Cin_p + ci] = w_oihw[co, ci, dy, dx],  t = dy*3 + dx.
    w_taps = jnp.transpose(w_oihw, (2, 3, 0, 1)).reshape(9, cout, cin)
    w_taps = jnp.pad(w_taps, ((0, 0), (0, 0), (0, cin_p - cin)))
    w2d = jnp.transpose(w_taps, (1, 0, 2)).reshape(cout, 9 * cin_p)
    w2d = jnp.pad(w2d, ((0, cout_p - cout), (0, 0))).astype(jnp.float32)

    # Epilogue params, pre-folded in the wrapper:
    #   ReLU(z)*gamma = ReLU(z*gamma) for gamma >= 0, so
    #   scale' = bn_scale*gamma, shift' = bn_shift*gamma,
    #   bias[b, co] = coords[b] @ w_coords[:, co]  (tiny matmul, done here).
    scale_f = (bn_scale * affine_gamma).astype(jnp.float32)
    shift_f = (bn_shift * affine_gamma).astype(jnp.float32)
    bias = coords.astype(jnp.float32) @ w_coords.astype(jnp.float32)   # (B, Cout)
    params = jnp.stack([jnp.broadcast_to(scale_f, (b, cout)),
                        jnp.broadcast_to(shift_f, (b, cout)),
                        bias], axis=-1)                                # (B, Cout, 3)
    params = jnp.pad(params, ((0, 0), (0, cout_p - cout), (0, 0)))

    tap_offsets = tuple(dy * wp + dx for dy in range(3) for dx in range(3))
    kernel = functools.partial(_fused_chain_kernel, tap_offsets=tap_offsets,
                               lout_pad=lout_pad)

    # grid=(B,) "parallel": exactly num_cores blocks on v7x for B=2; one extra
    # ~0.35 us step on single-TC v5e/v6e.  Weights/params blocks have constant
    # index maps so they are fetched once and revisited.
    # TODO(synk): add a spatial (row-block) grid axis + explicit
    # vmem_limit_bytes before reusing this template at large H*W
    # (v7x: 64 MiB physical VMEM; v5e: 16 MiB default scoped limit).
    out_flat = pl.pallas_call(
        kernel,
        out_shape=jax.ShapeDtypeStruct((b, cout_p, lout_pad), jnp.float32),
        grid_spec=pltpu.PrefetchScalarGridSpec(
            num_scalar_prefetch=0,
            grid=(b,),
            in_specs=[
                pl.BlockSpec((1, cin_p, lpad), lambda i: (i, 0, 0)),
                pl.BlockSpec((cout_p, 9 * cin_p), lambda i: (0, 0)),
                pl.BlockSpec((1, cout_p, 3), lambda i: (i, 0, 0)),
            ],
            out_specs=pl.BlockSpec((1, cout_p, lout_pad), lambda i: (i, 0, 0)),
        ),
        compiler_params=pltpu.CompilerParams(
            dimension_semantics=("parallel",)),
    )(xflat, w2d, params)

    # Crop: lane padding (lout..lout_pad), the 2 junk columns per row, and any
    # channel padding.  The reshape is already NCHW — no transpose anywhere.
    return out_flat[:, :cout, :lout].reshape(b, cout, h, wp)[:, :, :, :w]


# ----------------------------------------------------------------------------
# "Modules" mirroring the PyTorch sub-modules placed inside CustomSequential.
# Their .forward methods are the plain-JAX fallback / reference path; the
# fused Pallas kernel above is used by CustomSequential.forward for the
# ConvBNReLU -> CoordsAffine chain.
# ----------------------------------------------------------------------------
class ConvBNReLU:
    """Conv2d(cin, cout, 3, padding=1, bias=False) + BatchNorm2d (eval) + ReLU."""

    def __init__(self, key, cin, cout, eps=1e-5):
        self.cin, self.cout = cin, cout
        self.w_oihw = jax.random.normal(key, (cout, cin, 3, 3), jnp.float32) * 0.1
        self.bn_gamma = jnp.linspace(0.5, 1.5, cout, dtype=jnp.float32)
        self.bn_beta = jnp.linspace(-0.2, 0.2, cout, dtype=jnp.float32)
        self.bn_mean = jnp.linspace(-0.1, 0.1, cout, dtype=jnp.float32)
        self.bn_var = jnp.linspace(0.5, 1.0, cout, dtype=jnp.float32)
        self.eps = eps

    def folded_bn(self):
        scale = self.bn_gamma / jnp.sqrt(self.bn_var + self.eps)
        shift = self.bn_beta - self.bn_mean * scale
        return scale, shift

    def forward(self, x):
        out = lax.conv_general_dilated(
            x, self.w_oihw, window_strides=(1, 1), padding="SAME",
            dimension_numbers=("NCHW", "OIHW", "NCHW"))
        scale, shift = self.folded_bn()
        out = out * scale.reshape(1, -1, 1, 1) + shift.reshape(1, -1, 1, 1)
        return jnp.maximum(out, 0.0)


class CoordsAffine:
    """Coords-aware module: forward(x, coords) = x * gamma + proj(coords)."""

    def __init__(self, key, channels, coord_dim=2):
        self.channels = channels
        self.gamma = jnp.linspace(0.8, 1.2, channels, dtype=jnp.float32)
        self.w_coords = jax.random.normal(key, (coord_dim, channels),
                                          jnp.float32) * 0.1

    def forward(self, x, coords):
        bias = coords @ self.w_coords                        # (B, C)
        return x * self.gamma.reshape(1, -1, 1, 1) + bias[:, :, None, None]


# ----------------------------------------------------------------------------
# CustomSequential: same dispatch semantics as the PyTorch module, with a
# fused single-kernel fast path for the concrete ConvBNReLU -> CoordsAffine
# chain.
# ----------------------------------------------------------------------------
class CustomSequential:
    def __init__(self, *args):
        self.modules_list = list(args)

    def forward(self, x, *args):
        if (len(self.modules_list) == 2
                and isinstance(self.modules_list[0], ConvBNReLU)
                and isinstance(self.modules_list[1], CoordsAffine)
                and len(args) == 1):
            conv, aff = self.modules_list
            # Folding gamma through ReLU needs gamma >= 0 (concrete check,
            # performed outside jit); otherwise take the generic path.
            if bool(jnp.all(aff.gamma >= 0)):
                bn_scale, bn_shift = conv.folded_bn()
                return fused_conv_bn_relu_coords_affine(
                    x, args[0], conv.w_oihw, bn_scale, bn_shift,
                    aff.gamma, aff.w_coords)
        # Generic path — exact PyTorch CustomSequential dispatch rule.
        # TODO(synk): generic (non-matching) chains fall back to plain-JAX
        # per-module forwards rather than per-module Pallas kernels.
        for module in self.modules_list:
            if 'coords' in module.forward.__code__.co_varnames:
                x = module.forward(x, *args)
            else:
                x = module.forward(x)
        return x

    def reference(self, x, *args):
        out = x
        for module in self.modules_list:
            if 'coords' in module.forward.__code__.co_varnames:
                out = module.forward(out, *args)
            else:
                out = module.forward(out)
        return out


if __name__ == "__main__":
    key = jax.random.PRNGKey(0)
    kx, kc, kp1, kp2 = jax.random.split(key, 4)

    B, Cin, H, W, Cout = 2, 4, 16, 16, 8
    x = jax.random.normal(kx, (B, Cin, H, W), jnp.float32)       # NCHW input
    coords = jax.random.normal(kc, (B, 2), jnp.float32)

    model = CustomSequential(
        ConvBNReLU(kp1, Cin, Cout),
        CoordsAffine(kp2, Cout, coord_dim=2),
    )

    out = jax.block_until_ready(model.forward(x, coords))        # fused Pallas path
    ref = jax.block_until_ready(model.reference(x, coords))      # pure-JAX reference

    assert out.shape == (B, Cout, H, W)
    max_err = float(jnp.max(jnp.abs(out - ref)))
    assert jnp.allclose(out, ref, atol=1e-4, rtol=1e-4), max_err

    print("KERNEL_OK")
</pallas_src>

<mosaic_0001>
module attributes {stable_mosaic.version = 11 : i64} {
  func.func @_fused_chain_kernel(%arg0: i32, %arg1: memref<1x8x512xf32, #tpu.memory_space<vmem>>, %arg2: memref<8x72xf32, #tpu.memory_space<vmem>>, %arg3: memref<1x8x3xf32, #tpu.memory_space<vmem>>, %arg4: memref<1x8x384xf32, #tpu.memory_space<vmem>>) attributes {dimension_semantics = [#tpu.dimension_semantics<parallel>], iteration_bounds = array<i64: 2>, scalar_prefetch = 0 : i64, scratch_operands = 0 : i64, tpu.core_type = #tpu.core_type<tc>, window_params = [{transform_indices = @transform_0, window_bounds = array<i64: 1, 8, 512>}, {pipeline_mode = #tpu.pipeline_mode<synchronous>, transform_indices = @transform_1, window_bounds = array<i64: 8, 72>}, {transform_indices = @transform_2, window_bounds = array<i64: 1, 8, 3>}, {transform_indices = @transform_3, window_bounds = array<i64: 1, 8, 384>}]} {
    %c0 = arith.constant 0 : index
    %c0_0 = arith.constant 0 : index
    %c0_1 = arith.constant 0 : index
    %0 = vector.load %arg1[%c0, %c0_0, %c0_1] : memref<1x8x512xf32, #tpu.memory_space<vmem>>, vector<1x8x384xf32>
    %1 = vector.shape_cast %0 : vector<1x8x384xf32> to vector<8x384xf32>
    %c0_2 = arith.constant 0 : index
    %c0_3 = arith.constant 0 : index
    %c1 = arith.constant 1 : index
    %2 = vector.load %arg1[%c0_2, %c0_3, %c1] : memref<1x8x512xf32, #tpu.memory_space<vmem>>, vector<1x8x384xf32>
    %3 = vector.shape_cast %2 : vector<1x8x384xf32> to vector<8x384xf32>
    %c0_4 = arith.constant 0 : index
    %c0_5 = arith.constant 0 : index
    %c2 = arith.constant 2 : index
    %4 = vector.load %arg1[%c0_4, %c0_5, %c2] : memref<1x8x512xf32, #tpu.memory_space<vmem>>, vector<1x8x384xf32>
    %5 = vector.shape_cast %4 : vector<1x8x384xf32> to vector<8x384xf32>
    %c0_6 = arith.constant 0 : index
    %c0_7 = arith.constant 0 : index
    %c18 = arith.constant 18 : index
    %6 = vector.load %arg1[%c0_6, %c0_7, %c18] : memref<1x8x512xf32, #tpu.memory_space<vmem>>, vector<1x8x384xf32>
    %7 = vector.shape_cast %6 : vector<1x8x384xf32> to vector<8x384xf32>
    %c0_8 = arith.constant 0 : index
    %c0_9 = arith.constant 0 : index
    %c19 = arith.constant 19 : index
    %8 = vector.load %arg1[%c0_8, %c0_9, %c19] : memref<1x8x512xf32, #tpu.memory_space<vmem>>, vector<1x8x384xf32>
    %9 = vector.shape_cast %8 : vector<1x8x384xf32> to vector<8x384xf32>
    %c0_10 = arith.constant 0 : index
    %c0_11 = arith.constant 0 : index
    %c20 = arith.constant 20 : index
    %10 = vector.load %arg1[%c0_10, %c0_11, %c20] : memref<1x8x512xf32, #tpu.memory_space<vmem>>, vector<1x8x384xf32>
    %11 = vector.shape_cast %10 : vector<1x8x384xf32> to vector<8x384xf32>
    %c0_12 = arith.constant 0 : index
    %c0_13 = arith.constant 0 : index
    %c36 = arith.constant 36 : index
    %12 = vector.load %arg1[%c0_12, %c0_13, %c36] : memref<1x8x512xf32, #tpu.memory_space<vmem>>, vector<1x8x384xf32>
    %13 = vector.shape_cast %12 : vector<1x8x384xf32> to vector<8x384xf32>
    %c0_14 = arith.constant 0 : index
    %c0_15 = arith.constant 0 : index
    %c37 = arith.constant 37 : index
    %14 = vector.load %arg1[%c0_14, %c0_15, %c37] : memref<1x8x512xf32, #tpu.memory_space<vmem>>, vector<1x8x384xf32>
    %15 = vector.shape_cast %14 : vector<1x8x384xf32> to vector<8x384xf32>
    %c0_16 = arith.constant 0 : index
    %c0_17 = arith.constant 0 : index
    %c38 = arith.constant 38 : index
    %16 = vector.load %arg1[%c0_16, %c0_17, %c38] : memref<1x8x512xf32, #tpu.memory_space<vmem>>, vector<1x8x384xf32>
    %17 = vector.shape_cast %16 : vector<1x8x384xf32> to vector<8x384xf32>
    %18 = tpu.concatenate %1, %3, %5, %7, %9, %11, %13, %15, %17 in 0 : vector<8x384xf32>, vector<8x384xf32>, vector<8x384xf32>, vector<8x384xf32>, vector<8x384xf32>, vector<8x384xf32>, vector<8x384xf32>, vector<8x384xf32>, vector<8x384xf32> -> vector<72x384xf32>
    %c0_18 = arith.constant 0 : index
    %c0_19 = arith.constant 0 : index
    %19 = vector.load %arg2[%c0_18, %c0_19] : memref<8x72xf32, #tpu.memory_space<vmem>>, vector<8x72xf32>
    %cst = arith.constant dense<0.000000e+00> : vector<8x384xf32>
    %20 = tpu.matmul %19, %18, %cst {dimension_numbers = #tpu.dot_dimension_numbers<[1], [0], [0], [1], [0, 0, 1, 1], [], []>} : vector<8x72xf32>, vector<72x384xf32>, vector<8x384xf32> -> vector<8x384xf32>
    %c0_20 = arith.constant 0 : index
    %c0_21 = arith.constant 0 : index
    %c0_22 = arith.constant 0 : index
    %21 = vector.load %arg3[%c0_20, %c0_21, %c0_22] : memref<1x8x3xf32, #tpu.memory_space<vmem>>, vector<1x8x1xf32>
    %22 = vector.shape_cast %21 : vector<1x8x1xf32> to vector<8x1xf32>
    %c0_23 = arith.constant 0 : index
    %c0_24 = arith.constant 0 : index
    %c1_25 = arith.constant 1 : index
    %23 = vector.load %arg3[%c0_23, %c0_24, %c1_25] : memref<1x8x3xf32, #tpu.memory_space<vmem>>, vector<1x8x1xf32>
    %24 = vector.shape_cast %23 : vector<1x8x1xf32> to vector<8x1xf32>
    %c0_26 = arith.constant 0 : index
    %c0_27 = arith.constant 0 : index
    %c2_28 = arith.constant 2 : index
    %25 = vector.load %arg3[%c0_26, %c0_27, %c2_28] : memref<1x8x3xf32, #tpu.memory_space<vmem>>, vector<1x8x1xf32>
    %26 = vector.shape_cast %25 : vector<1x8x1xf32> to vector<8x1xf32>
    %27 = vector.broadcast %22 : vector<8x1xf32> to vector<8x384xf32>
    %28 = arith.mulf %20, %27 : vector<8x384xf32>
    %29 = vector.broadcast %24 : vector<8x1xf32> to vector<8x384xf32>
    %30 = arith.addf %28, %29 : vector<8x384xf32>
    %cst_29 = arith.constant 0.000000e+00 : f32
    %31 = vector.broadcast %cst_29 : f32 to vector<8x384xf32>
    %32 = arith.maximumf %30, %31 : vector<8x384xf32>
    %33 = vector.broadcast %26 : vector<8x1xf32> to vector<8x384xf32>
    %34 = arith.addf %32, %33 : vector<8x384xf32>
    %c0_30 = arith.constant 0 : index
    %c0_31 = arith.constant 0 : index
    %c0_32 = arith.constant 0 : index
    %35 = vector.load %arg4[%c0_30, %c0_31, %c0_32] : memref<1x8x384xf32, #tpu.memory_space<vmem>>, vector<1x8x384xf32>
    %36 = vector.shape_cast %35 : vector<1x8x384xf32> to vector<8x384xf32>
    %37 = vector.shape_cast %34 : vector<8x384xf32> to vector<1x8x384xf32>
    tpu.vector_store %arg4[%c0_30, %c0_31, %c0_32], %37 {strides = array<i32>} : memref<1x8x384xf32, #tpu.memory_space<vmem>>, vector<1x8x384xf32>,
    return
  }
  func.func @transform_0(%arg0: i32) -> (i32, i32, i32) {
    %c0_i32 = arith.constant 0 : i32
    %c0_i32_0 = arith.constant 0 : i32
    %c0_i32_1 = arith.constant 0 : i32
    return %arg0, %c0_i32, %c0_i32_0 : i32, i32, i32
  }
  func.func @transform_1(%arg0: i32) -> (i32, i32) {
    %c0_i32 = arith.constant 0 : i32
    %c0_i32_0 = arith.constant 0 : i32
    %c0_i32_1 = arith.constant 0 : i32
    return %c0_i32, %c0_i32_0 : i32, i32
  }
  func.func @transform_2(%arg0: i32) -> (i32, i32, i32) {
    %c0_i32 = arith.constant 0 : i32
    %c0_i32_0 = arith.constant 0 : i32
    %c0_i32_1 = arith.constant 0 : i32
    return %arg0, %c0_i32, %c0_i32_0 : i32, i32, i32
  }
  func.func @transform_3(%arg0: i32) -> (i32, i32, i32) {
    %c0_i32 = arith.constant 0 : i32
    %c0_i32_0 = arith.constant 0 : i32
    %c0_i32_1 = arith.constant 0 : i32
    return %arg0, %c0_i32, %c0_i32_0 : i32, i32, i32
  }
}

</mosaic_0001>

<bundles_post_ra>
// kernel: fused_conv_bn_relu_coords_affine.1
= control target key start
LH: loop header
LB: loop body
LE: loop exit
PB: predicated region body
PF: predicated region fallthrough
CT: control target
= control target key end

     0   :  { %s673_s12 = smov 0   ;;  %s769_s0 = inlined_call_operand.vmem [shape: f32[2,8,512], index: 0, kind: input, shape index: {}]   ;;  %s770_s1 = inlined_call_operand.vmem [shape: f32[8,72], index: 1, kind: input, shape index: {}]   ;;  %s771_s2 = inlined_call_operand.vmem [shape: f32[2,8,3], index: 2, kind: input, shape index: {}]   ;;  %s772_s3 = inlined_call_operand.vmem [shape: f32[2,8,384], index: 3, kind: output, shape index: {}]  }
   0x1 LB: > { %s561_s13 = sadd.s32 4294967295, %s638_s12   ;;  %p565_p0 = scmp.ge.s32.totalorder %s638_s12, 1  ;;  %s638_s12 = sphi %s673_s12, %s13_s12  }
   0x2   : > { %p146_p1 = scmp.lt.s32.totalorder %s638_s12, 3 }
   0x4   : > { %p147_p2 = pnand %p565_p0, %p146_p1 }
   0x5   : > { %p174_p3 = scmp.lt.s32.totalorder (!%p147_p2), %s561_s13, 1  ;;  %s641_s18 = smov (!%p147_p2), 90  }
   0x6   : > { %150 = sbr.rel (%p147_p2) target bundleno = 398 (0x18e), region = 32  ;;  %s642_s19 = smov (!%p147_p2), 91  }
   0x7   : > { %s643_s20 = smov (!%p147_p2), 92   ;;  %s644_s21 = smov (!%p147_p2), 108  }
   0x8   : > { %s645_s22 = smov (!%p147_p2), 109   ;;  %s646_s23 = smov (!%p147_p2), 110  }
   0x9   : > { %s647_s24 = smov (!%p147_p2), 126   ;;  %s648_s25 = smov (!%p147_p2), 127  }
   0xb   : > { %s774_s13 = smov (!%p174_p3, %s561_s13), 1  ;;  %v640_v2 = vmov 0.0   ;;  %vm649_vm0 = vmmov 0   ;;  %v650_v5 = vmov 0   ;;  %v651_v6 = vmov 1   ;;  %v319_v61 = vld [vmem:[%s770_s1] sm:$0xff] }
   0xc   : > { %s574_s14 = sshll.u32 %s774_s13, 5  ;;  %585 = vmatprep.subr.mxu1 %v640_v2  ;;  %388 = vmatprep.mubr.f32.mxu0 %v640_v2  ;;  %s568_s26 = sshll.u32 %s774_s13, 3  ;;  %v652_v8 = vmov 2   ;;  %vm312_vm1 = vcmask 736256   ;;  %vm297_vm2 = vcmask 744448   ;;  %vm282_vm3 = vcmask 752640  }
   0xd   : > { %s178_s17 = scalar_lea.vmem %s769_s0, %s574_s14  ;;  %603 = vmatprep.mubr.msk.f32.mxu1 %vm649_vm0, %v640_v2  ;;  %628 = vset.pattern.permute.xlu0 %v650_v5  ;;  %s182_s29 = scalar_lea.vmem %s771_s2, %s568_s26  ;;  %vm267_vm4 = vcmask 883712   ;;  %vm252_vm5 = vcmask 891904   ;;  %vm237_vm6 = vcmask 900096   ;;  %vm222_vm7 = vcmask 1031168  }
   0xe   : > { %v687_v0 = vld [vmem:[%s178_s17 + $0x8] sm:$0xff]  ;;  %v689_v1 = vld [vmem:[%s178_s17] sm:$0xff]  ;;  %v695_v3 = vld [vmem:[%s178_s17 + $0x10] sm:$0xff]  ;;  %629 = vset.pattern.permute.xlu1 %v651_v6  ;;  %vm207_vm8 = vcmask 1039360   ;;  %vm320_vm9 = vcmask 588800   ;;  %s606_s5 = smul.u32 24, %s774_s13 }
   0xf   : > { %306 = vrot.lane.b32.xlu0 %v687_v0, %s641_s18  ;;  %304 = vrot.lane.b32.xlu1 %v689_v1, %s641_s18  ;;  %v194_v4 = vld [vmem:[%s178_s17 + $0x18] sm:$0xff]  ;;  %v465_v7 = vld [vmem:[%s182_s29] sm:$0xff] }
  0x10   : > { %s187_s8 = scalar_lea.vmem %s772_s3, %s606_s5 }
  0x13   : > { %308 = vrot.lane.b32.xlu0 %v695_v3, %s641_s18  ;;  %291 = vrot.lane.b32.xlu1 %v687_v0, %s642_s19 }
  0x17   : > { %293 = vrot.lane.b32.xlu0 %v695_v3, %s642_s19  ;;  %289 = vrot.lane.b32.xlu1 %v689_v1, %s642_s19 }
  0x1b   : > { %310 = vrot.lane.b32.xlu0 %v194_v4, %s641_s18  ;;  %276 = vrot.lane.b32.xlu1 %v687_v0, %s643_s20 }
  0x1f   : > { %278 = vrot.lane.b32.xlu0 %v695_v3, %s643_s20  ;;  %274 = vrot.lane.b32.xlu1 %v689_v1, %s643_s20 }
  0x23   : > { %295 = vrot.lane.b32.xlu0 %v194_v4, %s642_s19  ;;  %261 = vrot.lane.b32.xlu1 %v687_v0, %s644_s21 }
  0x27   : > { %263 = vrot.lane.b32.xlu0 %v695_v3, %s644_s21  ;;  %259 = vrot.lane.b32.xlu1 %v689_v1, %s644_s21 }
  0x2b   : > { %280 = vrot.lane.b32.xlu0 %v194_v4, %s643_s20  ;;  %246 = vrot.lane.b32.xlu1 %v687_v0, %s645_s22 }
  0x2f   : > { %248 = vrot.lane.b32.xlu0 %v695_v3, %s645_s22  ;;  %244 = vrot.lane.b32.xlu1 %v689_v1, %s645_s22 }
  0x33   : > { %265 = vrot.lane.b32.xlu0 %v194_v4, %s644_s21  ;;  %231 = vrot.lane.b32.xlu1 %v687_v0, %s646_s23 }
  0x37   : > { %233 = vrot.lane.b32.xlu0 %v695_v3, %s646_s23  ;;  %229 = vrot.lane.b32.xlu1 %v689_v1, %s646_s23 }
  0x3b   : > { %250 = vrot.lane.b32.xlu0 %v194_v4, %s645_s22  ;;  %216 = vrot.lane.b32.xlu1 %v687_v0, %s647_s24 }
  0x3f   : > { %218 = vrot.lane.b32.xlu0 %v695_v3, %s647_s24  ;;  %214 = vrot.lane.b32.xlu1 %v689_v1, %s647_s24 }
  0x43   : > { %235 = vrot.lane.b32.xlu0 %v194_v4, %s646_s23  ;;  %201 = vrot.lane.b32.xlu1 %v687_v0, %s648_s25 }
  0x47   : > { %203 = vrot.lane.b32.xlu0 %v695_v3, %s648_s25  ;;  %199 = vrot.lane.b32.xlu1 %v689_v1, %s648_s25 }
  0x4b   : > { %220 = vrot.lane.b32.xlu0 %v194_v4, %s647_s24  ;;  %205 = vrot.lane.b32.xlu1 %v194_v4, %s648_s25 }
  0x4f   : > { %468 = vperm.xlu0 %628, %v465_v7   ;;  %475 = vperm.xlu1 %629, %v465_v7  }
  0x53   : > { %630 = vset.pattern.permute.xlu1 %v652_v8  ;;  %631 = vset.pattern.permute.xlu0 %v652_v8 }
  0x54   : > { %485 = vperm.xlu1 %630, %v465_v7  }
  0x81   : > { %v307_v9 = vpop.permute.xlu0 %306  ;;  %v305_v10 = vpop.permute.xlu1 %304 }
  0x82   : > { %v313_v14 = vsel %vm312_vm1, %v305_v10, %v307_v9 }
  0x85   : > { %v309_v11 = vpop.permute.xlu0 %308  ;;  %v292_v12 = vpop.permute.xlu1 %291 }
  0x86   : > { %v314_v13 = vsel %vm312_vm1, %v307_v9, %v309_v11 }
  0x87   : > { %338 = vmatprep.subr.mxu0 %v314_v13 }
  0x88   : > { %339 = vmatpush1.msra.mxu0 %v313_v14 }
  0x89   : > { %v294_v15 = vpop.permute.xlu0 %293  ;;  %v290_v16 = vpop.permute.xlu1 %289 }
  0x8a   : > { %v299_v17 = vsel %vm297_vm2, %v292_v12, %v294_v15  ;;  %v298_v18 = vsel %vm297_vm2, %v290_v16, %v292_v12 }
  0x8b   : > { %340 = vmatprep.subr.mxu0 %v299_v17 }
  0x8c   : > { %341 = vmatpush1.msra.mxu0 %v298_v18 }
  0x8d   : > { %v311_v19 = vpop.permute.xlu0 %310  ;;  %v277_v20 = vpop.permute.xlu1 %276 }
  0x8e   : > { %v315_v21 = vsel %vm312_vm1, %v309_v11, %v311_v19 }
  0x8f   : > { %586 = vmatpush3.msra.mxu1 %v315_v21 }
  0x90   : > { %587 = vmatprep.subr.mxu1 %v640_v2 }
  0x91   : > { %v279_v22 = vpop.permute.xlu0 %278  ;;  %v275_v23 = vpop.permute.xlu1 %274 }
  0x92   : > { %v284_v24 = vsel %vm282_vm3, %v277_v20, %v279_v22  ;;  %v283_v25 = vsel %vm282_vm3, %v275_v23, %v277_v20 }
  0x93   : > { %342 = vmatprep.subr.mxu0 %v284_v24 }
  0x94   : > { %343 = vmatpush1.msra.mxu0 %v283_v25 }
  0x95   : > { %v296_v26 = vpop.permute.xlu0 %295  ;;  %v262_v27 = vpop.permute.xlu1 %261 }
  0x96   : > { %v300_v28 = vsel %vm297_vm2, %v294_v15, %v296_v26 }
  0x97   : > { %588 = vmatpush3.msra.mxu1 %v300_v28 }
  0x98   : > { %589 = vmatprep.subr.mxu1 %v640_v2 }
  0x99   : > { %v264_v29 = vpop.permute.xlu0 %263  ;;  %v260_v30 = vpop.permute.xlu1 %259 }
  0x9a   : > { %v269_v31 = vsel %vm267_vm4, %v262_v27, %v264_v29  ;;  %v268_v32 = vsel %vm267_vm4, %v260_v30, %v262_v27 }
  0x9b   : > { %344 = vmatprep.subr.mxu0 %v269_v31 }
  0x9c   : > { %345 = vmatpush1.msra.mxu0 %v268_v32 }
  0x9d   : > { %v281_v33 = vpop.permute.xlu0 %280  ;;  %v247_v34 = vpop.permute.xlu1 %246 }
  0x9e   : > { %v285_v35 = vsel %vm282_vm3, %v279_v22, %v281_v33 }
  0x9f   : > { %590 = vmatpush3.msra.mxu1 %v285_v35 }
  0xa0   : > { %591 = vmatprep.subr.mxu1 %v640_v2 }
  0xa1   : > { %v249_v36 = vpop.permute.xlu0 %248  ;;  %v245_v37 = vpop.permute.xlu1 %244 }
  0xa2   : > { %v254_v38 = vsel %vm252_vm5, %v247_v34, %v249_v36  ;;  %v253_v39 = vsel %vm252_vm5, %v245_v37, %v247_v34 }
  0xa3   : > { %346 = vmatprep.subr.mxu0 %v254_v38 }
  0xa4   : > { %347 = vmatpush1.msra.mxu0 %v253_v39 }
  0xa5   : > { %v266_v40 = vpop.permute.xlu0 %265  ;;  %v232_v41 = vpop.permute.xlu1 %231 }
  0xa6   : > { %v270_v42 = vsel %vm267_vm4, %v264_v29, %v266_v40 }
  0xa7   : > { %592 = vmatpush3.msra.mxu1 %v270_v42 }
  0xa8   : > { %593 = vmatprep.subr.mxu1 %v640_v2 }
  0xa9   : > { %v234_v43 = vpop.permute.xlu0 %233  ;;  %v230_v44 = vpop.permute.xlu1 %229 }
  0xaa   : > { %v239_v45 = vsel %vm237_vm6, %v232_v41, %v234_v43  ;;  %v238_v46 = vsel %vm237_vm6, %v230_v44, %v232_v41 }
  0xab   : > { %348 = vmatprep.subr.mxu0 %v239_v45 }
  0xac   : > { %349 = vmatpush1.msra.mxu0 %v238_v46 }
  0xad   : > { %v251_v47 = vpop.permute.xlu0 %250  ;;  %v217_v48 = vpop.permute.xlu1 %216 }
  0xae   : > { %v255_v49 = vsel %vm252_vm5, %v249_v36, %v251_v47 }
  0xaf   : > { %594 = vmatpush3.msra.mxu1 %v255_v49 }
  0xb0   : > { %595 = vmatprep.subr.mxu1 %v640_v2 }
  0xb1   : > { %v219_v50 = vpop.permute.xlu0 %218  ;;  %v215_v51 = vpop.permute.xlu1 %214 }
  0xb2   : > { %v224_v52 = vsel %vm222_vm7, %v217_v48, %v219_v50  ;;  %v223_v53 = vsel %vm222_vm7, %v215_v51, %v217_v48 }
  0xb3   : > { %350 = vmatprep.subr.mxu0 %v224_v52 }
  0xb4   : > { %351 = vmatpush1.msra.mxu0 %v223_v53 }
  0xb5   : > { %v236_v54 = vpop.permute.xlu0 %235  ;;  %v202_v55 = vpop.permute.xlu1 %201 }
  0xb6   : > { %v240_v56 = vsel %vm237_vm6, %v234_v43, %v236_v54 }
  0xb7   : > { %596 = vmatpush3.msra.mxu1 %v240_v56 }
  0xb8   : > { %597 = vmatprep.subr.mxu1 %v640_v2 }
  0xb9   : > { %v204_v57 = vpop.permute.xlu0 %203  ;;  %v200_v58 = vpop.permute.xlu1 %199 }
  0xba   : > { %v209_v59 = vsel %vm207_vm8, %v202_v55, %v204_v57  ;;  %v208_v60 = vsel %vm207_vm8, %v200_v58, %v202_v55 }
  0xbb   : > { %352 = vmatprep.subr.mxu0 %v209_v59 }
  0xbc   : > { %353 = vmatpush1.msra.mxu0 %v208_v60 }
  0xbd   : > { %v221_v62 = vpop.permute.xlu0 %220  ;;  %v206_v63 = vpop.permute.xlu1 %205  ;;  %354 = vmatprep.subr.mxu0 %v687_v0 }
  0xbe   : > { %355 = vmatpush1.msra.mxu0 %v689_v1  ;;  %v225_v4 = vsel %vm222_vm7, %v219_v50, %v221_v62  ;;  %v210_v5 = vsel %vm207_vm8, %v204_v57, %v206_v63 }
  0xbf   : > { %598 = vmatpush3.msra.mxu1 %v225_v4  ;;  %570 = vmatmul.mubr.msk.f32.vlgmr.msra.gmra.mxu0 %vm320_vm9, %v319_v61 }
  0xc0   : > { %599 = vmatprep.subr.mxu1 %v640_v2 }
  0xc1   : > { %600 = vmatpush3.msra.mxu1 %v210_v5 }
  0xc2   : > { %601 = vmatprep.subr.mxu1 %v640_v2 }
  0xc3   : > { %602 = vmatpush3.msra.mxu1 %v695_v3 }
  0xc4   : > { %604 = vmatmul.mubr.msk.f32.vlgmr.msra.gmra.mxu1 %vm320_vm9, %v319_v61 }
  0xca   : > { %v469_v6 = vpop.permute.xlu0 %468  ;;  %v476_v7 = vpop.permute.xlu1 %475 }
  0xcf   : > { %v486_v11 = vpop.permute.xlu1 %485 }
 0x17f   : > { %v390_v0 = vpop.f32.mrf.mxu0 }
 0x180   : > { %v471_v8 = vmul.f32 %v469_v6, %v390_v0 }
 0x181   : > { %v392_v9 = vpop.f32.mrf.mxu0 }
 0x182   : > { %v472_v1 = vmul.f32 %v469_v6, %v392_v9  ;;  %v478_v10 = vadd.f32 %v476_v7, %v471_v8 }
 0x184   : > { %v479_v12 = vadd.f32 %v476_v7, %v472_v1  ;;  %v461_v13 = vpop.f32.mrf.mxu1  ;;  %v481_v14 = vmax.f32 %v478_v10, 0.0 }
 0x185   : > { %v473_v15 = vmul.f32 %v469_v6, %v461_v13 }
 0x186   : > { %v605_v2 = vpop.f32.mrf.mxu1  ;;  %v482_v3 = vmax.f32 %v479_v12, 0.0  ;;  %v488_v16 = vadd.f32 %v486_v11, %v481_v14 }
 0x187   : > { %v480_v17 = vadd.f32 %v476_v7, %v473_v15 }
 0x188   : > { %v489_v18 = vadd.f32 %v486_v11, %v482_v3  ;;  %491 = vst [vmem:[%s187_s8] sm:$0xff] %v488_v16 }
 0x189   : > { %v483_v19 = vmax.f32 %v480_v17, 0.0 }
 0x18a   : > { %492 = vst [vmem:[%s187_s8 + $0x8] sm:$0xff] %v489_v18 }
 0x18b   : > { %v490_v20 = vadd.f32 %v486_v11, %v483_v19 }
 0x18d   : > { %493 = vst [vmem:[%s187_s8 + $0x10] sm:$0xff] %v490_v20 }
 0x18e PF: > { %s13_s12 = sadd.s32 1, %s638_s12  }
 0x18f   : > { %p10_p4 = scmp.ge.s32.totalorder %s13_s12, 4  }
 0x191   :  { %12 = sbr.rel (!%p10_p4) target bundleno = 1 (0x1), region = 65 }

</bundles_post_ra>
